<compile_context>
chip_gen: v7x
topology: tpu7x:2x2x1
jax: 0.10.0
libtpu: 0.0.40
codegen_flags: <defaults>
</compile_context>

<pallas_src>
import jax
import jax.numpy as jnp
from jax.experimental import pallas as pl
from jax.experimental.pallas import tpu as pltpu

LANES = 128
ROW_ALIGN = 24          # lcm(3, 8): keeps the offset pattern block-invariant
MAX_BLOCK_ROWS = 1920   # multiple of 24; 1920*128*4B ~= 0.94 MiB per block


def dtarget_kernel(scale_ref, verts_ref, offpat_ref, out_ref):
    # Pure fused multiply-add on a lane-dense slab.
    out_ref[...] = verts_ref[...] * scale_ref[0] + offpat_ref[...]


def dtarget_forward(verts, scale, offset, *, max_block_rows=MAX_BLOCK_ROWS):
    """Pallas equivalent of Dtarget.forward().

    verts  : (N, 3) float32   (any N; padded internally)
    scale  : (1,)   float32
    offset : (3,)   float32
    returns (verts * scale + offset  (N, 3),
             log(scale)              (1,),
             log(scale)**2           (1,))
    """
    N, C = verts.shape
    assert C == 3

    verts = verts.astype(jnp.float32)
    scale = scale.astype(jnp.float32)
    offset = offset.astype(jnp.float32)

    # --- lane-dense flat layout -------------------------------------------
    flat = verts.reshape(-1)                       # (3N,)
    total = flat.shape[0]

    rows_needed = pl.cdiv(total, LANES)
    rows_needed = ((rows_needed + ROW_ALIGN - 1) // ROW_ALIGN) * ROW_ALIGN
    block_rows = min(max_block_rows, rows_needed)  # multiple of 24 (>= 8)
    grid_len = pl.cdiv(rows_needed, block_rows)
    rows_total = grid_len * block_rows
    padded = rows_total * LANES

    flat2d = jnp.pad(flat, (0, padded - total)).reshape(rows_total, LANES)

    # Offset pattern for one block: offpat[r, c] = offset[(r*128 + c) % 3].
    # Valid for every block because block starts are multiples of 384.
    idx = (jnp.arange(block_rows * LANES, dtype=jnp.int32) % 3
           ).reshape(block_rows, LANES)
    offpat = offset[idx]

    scale_smem = scale.reshape(1)

    out2d = pl.pallas_call(
        dtarget_kernel,
        out_shape=jax.ShapeDtypeStruct((rows_total, LANES), jnp.float32),
        grid_spec=pltpu.PrefetchScalarGridSpec(
            num_scalar_prefetch=0,
            grid=(grid_len,),
            in_specs=[
                # loop-invariant scalar parameter -> SMEM, no per-step DMA
                pl.BlockSpec(memory_space=pltpu.MemorySpace.SMEM),
                # vertex slab, streamed block by block
                pl.BlockSpec((block_rows, LANES), lambda i: (i, 0)),
                # offset pattern, constant block index -> DMA'd once
                pl.BlockSpec((block_rows, LANES), lambda i: (0, 0)),
            ],
            out_specs=pl.BlockSpec((block_rows, LANES), lambda i: (i, 0)),
        ),
        compiler_params=pltpu.CompilerParams(
            dimension_semantics=("parallel",)),
    )(scale_smem, flat2d, offpat)

    out = out2d.reshape(-1)[:total].reshape(N, 3)

    # Scalar side outputs: 2 flops, computed in the wrapper (not per grid step).
    log_scale = jnp.log(scale).reshape(1)
    loss = log_scale ** 2
    return out, log_scale, loss


def _check(verts, scale, offset, **kw):
    out, log_scale, loss = dtarget_forward(verts, scale, offset, **kw)
    jax.block_until_ready((out, log_scale, loss))
    ref_out = verts * scale + offset
    ref_log = jnp.log(scale)
    ref_loss = ref_log ** 2
    assert out.shape == verts.shape
    assert jnp.allclose(out, ref_out, atol=1e-5)
    assert jnp.allclose(log_scale, ref_log, atol=1e-6)
    assert jnp.allclose(loss, ref_loss, atol=1e-6)


if __name__ == "__main__":
    key = jax.random.PRNGKey(0)
    k_verts, k_scale, k_off, k_verts2 = jax.random.split(key, 4)

    # Parameters per Dtarget.__init__ shapes (scale: (1,), offset: (3,)),
    # perturbed so log(scale) is non-trivial.
    scale = jnp.ones((1,), jnp.float32) + 0.5 * jax.random.uniform(k_scale, (1,))
    offset = jnp.zeros((3,), jnp.float32) + 0.1 * jax.random.normal(k_off, (3,))

    # TODO(synk): BaseMesh / holes / get_is_boundary / index are bookkeeping
    # state unused by forward(); not reproduced here.

    # Small mesh (single grid point).
    verts = jax.random.normal(k_verts, (64, 3), dtype=jnp.float32)
    _check(verts, scale, offset)

    # Vertex count not a multiple of anything nice -> exercises padding path.
    verts_odd = jax.random.normal(k_verts2, (1000, 3), dtype=jnp.float32)
    _check(verts_odd, scale, offset)

    # Force multiple grid steps (tiny blocks) to validate the block-invariant
    # offset pattern and parallel grid axis.
    _check(verts_odd, scale, offset, max_block_rows=24)

    print("KERNEL_OK")
</pallas_src>

<mosaic_0001>
module attributes {stable_mosaic.version = 11 : i64} {
  func.func @dtarget_kernel(%arg0: i32, %arg1: memref<1xf32, #tpu.memory_space<smem>>, %arg2: memref<24x128xf32, #tpu.memory_space<vmem>>, %arg3: memref<24x128xf32, #tpu.memory_space<vmem>>, %arg4: memref<24x128xf32, #tpu.memory_space<vmem>>) attributes {dimension_semantics = [#tpu.dimension_semantics<parallel>], iteration_bounds = array<i64: 1>, scalar_prefetch = 0 : i64, scratch_operands = 0 : i64, tpu.core_type = #tpu.core_type<tc>, window_params = [{transform_indices = @transform_0, window_bounds = array<i64: 1>}, {transform_indices = @transform_1, window_bounds = array<i64: 24, 128>}, {pipeline_mode = #tpu.pipeline_mode<synchronous>, transform_indices = @transform_2, window_bounds = array<i64: 24, 128>}, {transform_indices = @transform_3, window_bounds = array<i64: 24, 128>}]} {
    %c0 = arith.constant 0 : index
    %c0_0 = arith.constant 0 : index
    %0 = vector.load %arg2[%c0, %c0_0] : memref<24x128xf32, #tpu.memory_space<vmem>>, vector<24x128xf32>
    %c0_1 = arith.constant 0 : index
    %1 = memref.load %arg1[%c0_1] : memref<1xf32, #tpu.memory_space<smem>>
    %2 = vector.broadcast %1 : f32 to vector<24x128xf32>
    %3 = arith.mulf %0, %2 : vector<24x128xf32>
    %c0_2 = arith.constant 0 : index
    %c0_3 = arith.constant 0 : index
    %4 = vector.load %arg3[%c0_2, %c0_3] : memref<24x128xf32, #tpu.memory_space<vmem>>, vector<24x128xf32>
    %5 = arith.addf %3, %4 : vector<24x128xf32>
    %c0_4 = arith.constant 0 : index
    %c0_5 = arith.constant 0 : index
    %6 = vector.load %arg4[%c0_4, %c0_5] : memref<24x128xf32, #tpu.memory_space<vmem>>, vector<24x128xf32>
    tpu.vector_store %arg4[%c0_4, %c0_5], %5 {strides = array<i32>} : memref<24x128xf32, #tpu.memory_space<vmem>>, vector<24x128xf32>,
    return
  }
  func.func @transform_0(%arg0: i32) -> i32 {
    %c0_i32 = arith.constant 0 : i32
    %c0_i32_0 = arith.constant 0 : i32
    return %c0_i32 : i32
  }
  func.func @transform_1(%arg0: i32) -> (i32, i32) {
    %c0_i32 = arith.constant 0 : i32
    %c0_i32_0 = arith.constant 0 : i32
    return %arg0, %c0_i32 : i32, i32
  }
  func.func @transform_2(%arg0: i32) -> (i32, i32) {
    %c0_i32 = arith.constant 0 : i32
    %c0_i32_0 = arith.constant 0 : i32
    %c0_i32_1 = arith.constant 0 : i32
    return %c0_i32, %c0_i32_0 : i32, i32
  }
  func.func @transform_3(%arg0: i32) -> (i32, i32) {
    %c0_i32 = arith.constant 0 : i32
    %c0_i32_0 = arith.constant 0 : i32
    return %arg0, %c0_i32 : i32, i32
  }
}

</mosaic_0001>

<bundles_post_ra>
// kernel: tpu_custom_call.1
= control target key start
LH: loop header
LB: loop body
LE: loop exit
PB: predicated region body
PF: predicated region fallthrough
CT: control target
= control target key end

     0   :  { %9 = vsyncpa [#allocation4], 0  ;;  %s229_s0 = inlined_call_operand.<no memory space> [shape: f32[1], index: 0, kind: input, shape index: {}]   ;;  %s230_s1 = inlined_call_operand.hbm [shape: f32[24,128], index: 1, kind: input, shape index: {}]   ;;  %s231_s2 = inlined_call_operand.hbm [shape: f32[24,128], index: 2, kind: input, shape index: {}]   ;;  %s232_s3 = inlined_call_operand.hbm [shape: f32[24,128], index: 3, kind: output, shape index: {}]  }
   0x1   :  { %10 = vsyncpa [#allocation7], 0 }
   0x2   :  { %11 = vsyncpa [#allocation5], 0  ;;  %s156_s12 = smov [#allocation3]   ;;  %s84_s16 = scalar_lea.hbm %s230_s1, 384 }
   0x3   :  { %s19_s13 = sshll.u32 %s156_s12, 4  ;;  %p85_p0 = scmp.ne.s32.totalorder %s230_s1, %s84_s16  ;;  %s20_s13 = int_to_ptr.vmem [resolvable:$true] %s19_s13 }
   0x4   :  { %p88_p1 = scmp.lt.u32.totalorder %s84_s16, %s230_s1 }
   0x6   :  { %p90_p2 = pnand %p88_p1, %p85_p0 }
   0x8   :  { %93 = shalt.err (!%p90_p2)
}
   0x9   :  { %s94_s21 = scalar_lea.vmem %s20_s13, 384  ;;  %p99_p4 = scmp.lt.s32.totalorder %s20_s13, %s20_s13 }
   0xa   :  { %p95_p3 = scmp.ne.s32.totalorder %s20_s13, %s94_s21  ;;  %p100_p5 = scmp.lt.s32.totalorder %s94_s21, %s94_s21 }
   0xc   :  { %p101_p6 = por %p100_p5, %p99_p4 }
   0xe   :  { %p102_p7 = pnand %p101_p6, %p95_p3 }
  0x10   :  { %105 = shalt.err (!%p102_p7)
}
  0x11   :  { %s157_s22 = smov 128   ;;  %s158_s23 = smov 8  }
  0x12   :  { %25 = dma.hbm_to_vmem [thread:$0]  %s230_s1, 384, %s20_s13, [#allocation4], %s157_s22, %s157_s22, %s158_s23  }
  0x13   :  { %s159_s26 = smov [#allocation6]   ;;  %s106_s30 = scalar_lea.hbm %s231_s2, 384 }
  0x14   :  { %s31_s27 = sshll.u32 %s159_s26, 4  ;;  %p107_p8 = scmp.ne.s32.totalorder %s231_s2, %s106_s30  ;;  %s32_s27 = int_to_ptr.vmem [resolvable:$true] %s31_s27 }
  0x15   :  { %p110_p9 = scmp.lt.u32.totalorder %s106_s30, %s231_s2 }
  0x17   :  { %p112_p10 = pnand %p110_p9, %p107_p8 }
  0x19   :  { %115 = shalt.err (!%p112_p10)
}
  0x1a   :  { %s116_s8 = scalar_lea.vmem %s32_s27, 384  ;;  %p121_p12 = scmp.lt.s32.totalorder %s32_s27, %s32_s27 }
  0x1b   :  { %p117_p11 = scmp.ne.s32.totalorder %s32_s27, %s116_s8  ;;  %p122_p13 = scmp.lt.s32.totalorder %s116_s8, %s116_s8 }
  0x1d   :  { %p123_p0 = por %p122_p13, %p121_p12 }
  0x1f   :  { %p124_p1 = pnand %p123_p0, %p117_p11 }
  0x21   :  { %127 = shalt.err (!%p124_p1)
}
  0x22   :  { %37 = dma.hbm_to_vmem [thread:$0]  %s231_s2, 384, %s32_s27, [#allocation7], %s157_s22, %s157_s22, %s158_s23  }
  0x23   :  { %150 = dma.done.wait [#allocation4], 384  }
  0x24   :  { %151 = vsyncadd [#allocation4], 4294966912 }
  0x25   :  { %152 = dma.done.wait [#allocation7], 384  }
  0x26   :  { %153 = vsyncadd [#allocation7], 4294966912  ;;  %v48_v0 = vstv %s229_s0  ;;  %v44_v1 = vld [vmem:[#allocation3] sm:$0xff]  ;;  %v52_v2 = vld [vmem:[#allocation6] sm:$0xff]  ;;  %s160_s12 = smov [#allocation8]  }
  0x27   :  { %v45_v3 = vld [vmem:[#allocation3 + $0x8] sm:$0xff]  ;;  %v49_v4 = vmul.f32 %v48_v0, %v44_v1  ;;  %v53_v6 = vld [vmem:[#allocation6 + $0x8] sm:$0xff]  ;;  %v46_v7 = vld [vmem:[#allocation3 + $0x10] sm:$0xff]  ;;  %s66_s13 = sshll.u32 %s160_s12, 4  ;;  %s67_s13 = int_to_ptr.vmem [resolvable:$true] %s66_s13 }
  0x28   :  { %v50_v5 = vmul.f32 %v48_v0, %v45_v3  ;;  %v54_v8 = vld [vmem:[#allocation6 + $0x10] sm:$0xff]  ;;  %v51_v9 = vmul.f32 %v48_v0, %v46_v7  ;;  %s128_s2 = scalar_lea.vmem %s67_s13, 384  ;;  %p133_p3 = scmp.lt.s32.totalorder %s67_s13, %s67_s13 }
  0x29   :  { %v55_v10 = vadd.f32 %v52_v2, %v49_v4  ;;  %p129_p2 = scmp.ne.s32.totalorder %s67_s13, %s128_s2  ;;  %p134_p4 = scmp.lt.s32.totalorder %s128_s2, %s128_s2 }
  0x2a   :  { %v56_v11 = vadd.f32 %v53_v6, %v50_v5  ;;  %v57_v12 = vadd.f32 %v54_v8, %v51_v9 }
  0x2b   :  { %58 = vst [vmem:[#allocation8] sm:$0xff] %v55_v10  ;;  %p135_p5 = por %p134_p4, %p133_p3 }
  0x2c   :  { %59 = vst [vmem:[#allocation8 + $0x8] sm:$0xff] %v56_v11  ;;  %60 = vst [vmem:[#allocation8 + $0x10] sm:$0xff] %v57_v12 }
  0x2d   :  { %p136_p6 = pnand %p135_p5, %p129_p2 }
  0x2f   :  { %139 = shalt.err (!%p136_p6)
}
  0x30   :  { %s140_s15 = scalar_lea.hbm %s232_s3, 384 }
  0x31   :  { %p141_p7 = scmp.ne.s32.totalorder %s232_s3, %s140_s15  ;;  %p144_p8 = scmp.lt.u32.totalorder %s140_s15, %s232_s3 }
  0x33   :  { %p146_p9 = pnand %p144_p8, %p141_p7 }
  0x35   :  { %149 = shalt.err (!%p146_p9)
}
  0x36   :  { %72 = dma.vmem_to_hbm [thread:$0]  %s67_s13, 384, %s232_s3, [#allocation5], %s157_s22, %s157_s22, %s158_s23  }
  0x37   :  { %154 = dma.done.wait [#allocation5], 384  }
  0x38   :  { %155 = vsyncadd [#allocation5], 4294966912 }
  0x39   :  { %76 = vsyncpa [#allocation4], 1 }
  0x3a   :  { %77 = vsyncpa [#allocation7], 1 }
  0x3b   :  { %78 = vsyncpa [#allocation5], 1 }

</bundles_post_ra>
